<compile_context>
chip_gen: v7x
topology: tpu7x:2x2x1
jax: 0.10.0
libtpu: 0.0.40
codegen_flags: <defaults>
</compile_context>

<pallas_src>
import jax
import jax.numpy as jnp
from jax import lax
from jax.experimental import pallas as pl
from jax.experimental.pallas import tpu as pltpu

NUM_CLASSES = 3
BETA = 0.9999
GAMMA = 2.0          # focal exponent; kernel hard-codes gamma == 2 (explicit square)
EPSILON = 1e-7
MAX_TILE_ROWS = 2048  # rows of 128 pixels per tile -> 256K pixels (~4 MiB f32 input/step)


def _make_kernel(tile_rows, acc_rows, num_tiles, rows_per_chunk, need_tail_mask):
    """Build the loss kernel with all tiling parameters baked in as constants."""
    groups = tile_rows // acc_rows

    def _fold(x):
        # (tile_rows, 128) -> (acc_rows, 128) via pure vreg adds over the leading axis.
        if groups == 1:
            return x
        return jnp.sum(x.reshape(groups, acc_rows, 128), axis=0)

    def kernel(w_ref, pred_ref, t_ref, out_ref, acc_ref):
        i = pl.program_id(2)
        last = num_tiles - 1

        @pl.when(i == 0)
        def _init():
            acc_ref[...] = jnp.zeros_like(acc_ref)

        p = pred_ref[...]                    # (1, C, 1, tile_rows, 128)
        t = t_ref[...][0, 0, 0]              # (tile_rows, 128) int32, -1 = padding
        r0 = p[0, 0, 0].astype(jnp.float32)  # dense (tile_rows, 128) per-class tiles
        r1 = p[0, 1, 0].astype(jnp.float32)
        r2 = p[0, 2, 0].astype(jnp.float32)
        w0 = w_ref[0, 0]
        w1 = w_ref[0, 1]
        w2 = w_ref[0, 2]

        # max-stabilised log-sum-exp over the 3 classes
        m = jnp.maximum(jnp.maximum(r0, r1), r2)
        lse = jnp.log(jnp.exp(r0 - m) + jnp.exp(r1 - m) + jnp.exp(r2 - m)) + m

        # target-logit gather + per-pixel class weight via nested selects
        picked = jnp.where(t == 0, r0, jnp.where(t == 1, r1, r2))
        w_t = jnp.where(t == 0, w0,
                        jnp.where(t == 1, w1,
                                  jnp.where(t == 2, w2, jnp.float32(0.0))))

        ce = w_t * (lse - picked)            # padded (-1) pixels: w_t == 0 -> ce == 0
        omp = 1.0 - jnp.exp(-ce)             # 1 - pt
        contrib = omp * omp * ce             # GAMMA == 2 -> explicit square (no pow)

        if need_tail_mask:
            # Only the last tile can read past rows_per_chunk (undefined data);
            # mask it with a select so NaN/Inf there cannot poison the accumulator.
            @pl.when(i != last)
            def _acc_full():
                acc_ref[...] += _fold(contrib)

            @pl.when(i == last)
            def _acc_tail():
                row = lax.broadcasted_iota(jnp.int32, contrib.shape, 0) + last * tile_rows
                masked = jnp.where(row < rows_per_chunk, contrib, jnp.float32(0.0))
                acc_ref[...] += _fold(masked)
        else:
            acc_ref[...] += _fold(contrib)

        @pl.when(i == last)
        def _fin():
            out_ref[...] = acc_ref[...].reshape(1, 1, acc_rows, 128)

    return kernel


@jax.jit
def ici_loss(pred, target):
    """pred: (N, C, H, W) float (f32 or bf16), target: (N, H, W) int. Returns scalar loss."""
    assert GAMMA == 2.0, "kernel hard-codes gamma == 2 (explicit square)"
    N, C, H, W = pred.shape
    assert C == NUM_CLASSES
    HW = H * W
    P = N * HW

    tgt = target.astype(jnp.int32)

    # ---- effective-number class weights (single fused pass over target) ----
    tgt_flat = tgt.reshape(-1)
    onehot = tgt_flat[:, None] == jnp.arange(NUM_CLASSES, dtype=jnp.int32)[None, :]
    counts = jnp.sum(onehot.astype(jnp.float32), axis=0) + jnp.float32(EPSILON)
    eff = 1.0 - jnp.power(jnp.float32(BETA), counts)
    w = (1.0 - BETA) / eff
    w = (w / jnp.sum(w) * NUM_CLASSES).astype(jnp.float32).reshape(1, NUM_CLASSES)

    # ---- lane-dense layout: pixels -> (rows, 128); pad only to the next 128 ----
    hw128 = ((HW + 127) // 128) * 128
    pred3 = pred.reshape(N, C, HW)
    t3 = tgt.reshape(N, 1, HW)
    if hw128 != HW:
        pred3 = jnp.pad(pred3, ((0, 0), (0, 0), (0, hw128 - HW)))
        t3 = jnp.pad(t3, ((0, 0), (0, 0), (0, hw128 - HW)), constant_values=-1)
    r_total = hw128 // 128

    # Second "parallel" axis: split the row axis into 2 super-chunks (free reshape,
    # no transpose) so both v7x TensorCores get work even when N == 1.
    nchunk = 2 if (r_total % 2 == 0 and r_total >= 16) else 1
    rows_per_chunk = r_total // nchunk
    pred5 = pred3.reshape(N, C, nchunk, rows_per_chunk, 128)
    t5 = t3.reshape(N, 1, nchunk, rows_per_chunk, 128)

    tile_rows = min(MAX_TILE_ROWS, rows_per_chunk)
    num_tiles = (rows_per_chunk + tile_rows - 1) // tile_rows
    need_tail_mask = (rows_per_chunk % tile_rows) != 0
    acc_rows = 8 if (tile_rows % 8 == 0 and tile_rows > 8) else tile_rows

    kernel = _make_kernel(tile_rows, acc_rows, num_tiles, rows_per_chunk, need_tail_mask)

    partials = pl.pallas_call(
        kernel,
        out_shape=jax.ShapeDtypeStruct((N, nchunk, acc_rows, 128), jnp.float32),
        grid_spec=pltpu.PrefetchScalarGridSpec(
            num_scalar_prefetch=0,
            grid=(N, nchunk, num_tiles),
            in_specs=[
                pl.BlockSpec(memory_space=pltpu.MemorySpace.SMEM),            # class weights
                pl.BlockSpec((1, NUM_CLASSES, 1, tile_rows, 128),
                             lambda n, ch, i: (n, 0, ch, i, 0)),              # pred tile
                pl.BlockSpec((1, 1, 1, tile_rows, 128),
                             lambda n, ch, i: (n, 0, ch, i, 0)),              # target tile
            ],
            out_specs=pl.BlockSpec((1, 1, acc_rows, 128),
                                   lambda n, ch, i: (n, ch, 0, 0)),           # per-(n,chunk) partial
            scratch_shapes=[pltpu.VMEM((acc_rows, 128), jnp.float32)],        # small accumulator
        ),
        compiler_params=pltpu.CompilerParams(
            dimension_semantics=("parallel", "parallel", "arbitrary")),
    )(w, pred5, t5)

    return jnp.sum(partials) / jnp.float32(P)


def _ref_loss(pred, target):
    """Pure-JAX reference mirroring the PyTorch module."""
    counts = jnp.stack([jnp.sum(target == c).astype(jnp.float32)
                        for c in range(NUM_CLASSES)]) + EPSILON
    eff = 1.0 - BETA ** counts
    w = (1.0 - BETA) / eff
    w = w / jnp.sum(w) * NUM_CLASSES
    logp = jax.nn.log_softmax(pred, axis=1)                       # (N, C, H, W)
    oh = jax.nn.one_hot(target, NUM_CLASSES, axis=1, dtype=jnp.float32)
    nll = -jnp.sum(oh * logp, axis=1)                             # (N, H, W)
    ce = w[target] * nll
    pt = jnp.exp(-ce)
    return jnp.mean((1.0 - pt) ** GAMMA * ce)


if __name__ == "__main__":
    key = jax.random.PRNGKey(0)
    k1, k2 = jax.random.split(key)
    pred = jax.random.normal(k1, (2, NUM_CLASSES, 16, 16), dtype=jnp.float32)
    target = jax.random.randint(k2, (2, 16, 16), 0, NUM_CLASSES, dtype=jnp.int32)

    loss = jax.block_until_ready(ici_loss(pred, target))
    ref = _ref_loss(pred, target)
    assert jnp.allclose(loss, ref, rtol=1e-4, atol=1e-6), (float(loss), float(ref))
    print("KERNEL_OK")
</pallas_src>

<mosaic_0001>
module attributes {stable_mosaic.version = 11 : i64} {
  func.func @kernel(%arg0: i32, %arg1: i32, %arg2: i32, %arg3: memref<1x3xf32, #tpu.memory_space<smem>>, %arg4: memref<1x3x1x2x128xf32, #tpu.memory_space<vmem>>, %arg5: memref<1x1x1x2x128xi32, #tpu.memory_space<vmem>>, %arg6: memref<1x1x2x128xf32, #tpu.memory_space<vmem>>, %arg7: memref<2x128xf32, #tpu.memory_space<vmem>>) attributes {dimension_semantics = [#tpu.dimension_semantics<parallel>, #tpu.dimension_semantics<parallel>, #tpu.dimension_semantics<arbitrary>], iteration_bounds = array<i64: 2, 1, 1>, scalar_prefetch = 0 : i64, scratch_operands = 1 : i64, tpu.core_type = #tpu.core_type<tc>, window_params = [{transform_indices = @transform_0, window_bounds = array<i64: 1, 3>}, {transform_indices = @transform_1, window_bounds = array<i64: 1, 3, 1, 2, 128>}, {transform_indices = @transform_2, window_bounds = array<i64: 1, 1, 1, 2, 128>}, {transform_indices = @transform_3, window_bounds = array<i64: 1, 1, 2, 128>}]} {
    %c0_i32 = arith.constant 0 : i32
    %0 = arith.cmpi eq, %arg2, %c0_i32 : i32
    %1 = arith.extui %0 : i1 to i32
    %c0_i32_0 = arith.constant 0 : i32
    %2 = arith.cmpi ne, %1, %c0_i32_0 : i32
    scf.if %2 {
      %cst_25 = arith.constant 0.000000e+00 : f32
      %61 = vector.broadcast %cst_25 : f32 to vector<2x128xf32>
      %c0_26 = arith.constant 0 : index
      %c0_27 = arith.constant 0 : index
      %62 = vector.load %arg7[%c0_26, %c0_27] : memref<2x128xf32, #tpu.memory_space<vmem>>, vector<2x128xf32>
      tpu.vector_store %arg7[%c0_26, %c0_27], %61 {strides = array<i32>} : memref<2x128xf32, #tpu.memory_space<vmem>>, vector<2x128xf32>,
    } else {
    }
    %c0 = arith.constant 0 : index
    %c0_1 = arith.constant 0 : index
    %c0_2 = arith.constant 0 : index
    %c0_3 = arith.constant 0 : index
    %c0_4 = arith.constant 0 : index
    %3 = vector.load %arg4[%c0, %c0_1, %c0_2, %c0_3, %c0_4] : memref<1x3x1x2x128xf32, #tpu.memory_space<vmem>>, vector<1x3x1x2x128xf32>
    %c0_5 = arith.constant 0 : index
    %c0_6 = arith.constant 0 : index
    %c0_7 = arith.constant 0 : index
    %c0_8 = arith.constant 0 : index
    %c0_9 = arith.constant 0 : index
    %4 = vector.load %arg5[%c0_5, %c0_6, %c0_7, %c0_8, %c0_9] : memref<1x1x1x2x128xi32, #tpu.memory_space<vmem>>, vector<1x1x1x2x128xi32>
    %5 = vector.shape_cast %4 : vector<1x1x1x2x128xi32> to vector<2x128xi32>
    %6 = vector.extract_strided_slice %3 {offsets = [0, 0, 0, 0, 0], sizes = [1, 1, 1, 2, 128], strides = [1, 1, 1, 1, 1]} : vector<1x3x1x2x128xf32> to vector<1x1x1x2x128xf32>
    %7 = vector.shape_cast %6 : vector<1x1x1x2x128xf32> to vector<2x128xf32>
    %8 = vector.extract_strided_slice %3 {offsets = [0, 1, 0, 0, 0], sizes = [1, 1, 1, 2, 128], strides = [1, 1, 1, 1, 1]} : vector<1x3x1x2x128xf32> to vector<1x1x1x2x128xf32>
    %9 = vector.shape_cast %8 : vector<1x1x1x2x128xf32> to vector<2x128xf32>
    %10 = vector.extract_strided_slice %3 {offsets = [0, 2, 0, 0, 0], sizes = [1, 1, 1, 2, 128], strides = [1, 1, 1, 1, 1]} : vector<1x3x1x2x128xf32> to vector<1x1x1x2x128xf32>
    %11 = vector.shape_cast %10 : vector<1x1x1x2x128xf32> to vector<2x128xf32>
    %c0_10 = arith.constant 0 : index
    %c0_11 = arith.constant 0 : index
    %12 = memref.load %arg3[%c0_10, %c0_11] : memref<1x3xf32, #tpu.memory_space<smem>>
    %c0_12 = arith.constant 0 : index
    %c1 = arith.constant 1 : index
    %13 = memref.load %arg3[%c0_12, %c1] : memref<1x3xf32, #tpu.memory_space<smem>>
    %c0_13 = arith.constant 0 : index
    %c2 = arith.constant 2 : index
    %14 = memref.load %arg3[%c0_13, %c2] : memref<1x3xf32, #tpu.memory_space<smem>>
    %15 = arith.maximumf %7, %9 : vector<2x128xf32>
    %16 = arith.maximumf %15, %11 : vector<2x128xf32>
    %17 = arith.subf %7, %16 : vector<2x128xf32>
    %18 = math.exp %17 : vector<2x128xf32>
    %19 = arith.subf %9, %16 : vector<2x128xf32>
    %20 = math.exp %19 : vector<2x128xf32>
    %21 = arith.addf %18, %20 : vector<2x128xf32>
    %22 = arith.subf %11, %16 : vector<2x128xf32>
    %23 = math.exp %22 : vector<2x128xf32>
    %24 = arith.addf %21, %23 : vector<2x128xf32>
    %25 = math.log %24 : vector<2x128xf32>
    %26 = arith.addf %25, %16 : vector<2x128xf32>
    %c0_i32_14 = arith.constant 0 : i32
    %27 = vector.broadcast %c0_i32_14 : i32 to vector<2x128xi32>
    %28 = arith.cmpi eq, %5, %27 : vector<2x128xi32>
    %c1_i32 = arith.constant 1 : i32
    %29 = vector.broadcast %c1_i32 : i32 to vector<2x128xi32>
    %30 = arith.cmpi eq, %5, %29 : vector<2x128xi32>
    %31 = arith.select %30, %9, %11 : vector<2x128xi1>, vector<2x128xf32>
    %32 = arith.select %28, %7, %31 : vector<2x128xi1>, vector<2x128xf32>
    %c0_i32_15 = arith.constant 0 : i32
    %33 = vector.broadcast %c0_i32_15 : i32 to vector<2x128xi32>
    %34 = arith.cmpi eq, %5, %33 : vector<2x128xi32>
    %c1_i32_16 = arith.constant 1 : i32
    %35 = vector.broadcast %c1_i32_16 : i32 to vector<2x128xi32>
    %36 = arith.cmpi eq, %5, %35 : vector<2x128xi32>
    %c2_i32 = arith.constant 2 : i32
    %37 = vector.broadcast %c2_i32 : i32 to vector<2x128xi32>
    %38 = arith.cmpi eq, %5, %37 : vector<2x128xi32>
    %cst = arith.constant 0.000000e+00 : f32
    %39 = vector.broadcast %14 : f32 to vector<2x128xf32>
    %40 = vector.broadcast %cst : f32 to vector<2x128xf32>
    %41 = arith.select %38, %39, %40 : vector<2x128xi1>, vector<2x128xf32>
    %42 = vector.broadcast %13 : f32 to vector<2x128xf32>
    %43 = arith.select %36, %42, %41 : vector<2x128xi1>, vector<2x128xf32>
    %44 = vector.broadcast %12 : f32 to vector<2x128xf32>
    %45 = arith.select %34, %44, %43 : vector<2x128xi1>, vector<2x128xf32>
    %46 = arith.subf %26, %32 : vector<2x128xf32>
    %47 = arith.mulf %45, %46 : vector<2x128xf32>
    %cst_17 = arith.constant 0.000000e+00 : f32
    %48 = vector.broadcast %cst_17 : f32 to vector<2x128xf32>
    %49 = arith.subf %48, %47 : vector<2x128xf32>
    %50 = math.exp %49 : vector<2x128xf32>
    %cst_18 = arith.constant 1.000000e+00 : f32
    %51 = vector.broadcast %cst_18 : f32 to vector<2x128xf32>
    %52 = arith.subf %51, %50 : vector<2x128xf32>
    %53 = arith.mulf %52, %52 : vector<2x128xf32>
    %54 = arith.mulf %53, %47 : vector<2x128xf32>
    %c0_19 = arith.constant 0 : index
    %c0_20 = arith.constant 0 : index
    %55 = vector.load %arg7[%c0_19, %c0_20] : memref<2x128xf32, #tpu.memory_space<vmem>>, vector<2x128xf32>
    %56 = arith.addf %55, %54 : vector<2x128xf32>
    %c0_21 = arith.constant 0 : index
    %c0_22 = arith.constant 0 : index
    %57 = vector.load %arg7[%c0_21, %c0_22] : memref<2x128xf32, #tpu.memory_space<vmem>>, vector<2x128xf32>
    tpu.vector_store %arg7[%c0_21, %c0_22], %56 {strides = array<i32>} : memref<2x128xf32, #tpu.memory_space<vmem>>, vector<2x128xf32>,
    %c0_i32_23 = arith.constant 0 : i32
    %58 = arith.cmpi eq, %arg2, %c0_i32_23 : i32
    %59 = arith.extui %58 : i1 to i32
    %c0_i32_24 = arith.constant 0 : i32
    %60 = arith.cmpi ne, %59, %c0_i32_24 : i32
    scf.if %60 {
      %c0_25 = arith.constant 0 : index
      %c0_26 = arith.constant 0 : index
      %61 = vector.load %arg7[%c0_25, %c0_26] : memref<2x128xf32, #tpu.memory_space<vmem>>, vector<2x128xf32>
      %62 = vector.shape_cast %61 : vector<2x128xf32> to vector<1x1x2x128xf32>
      %c0_27 = arith.constant 0 : index
      %c0_28 = arith.constant 0 : index
      %c0_29 = arith.constant 0 : index
      %c0_30 = arith.constant 0 : index
      %63 = vector.load %arg6[%c0_27, %c0_28, %c0_29, %c0_30] : memref<1x1x2x128xf32, #tpu.memory_space<vmem>>, vector<1x1x2x128xf32>
      tpu.vector_store %arg6[%c0_27, %c0_28, %c0_29, %c0_30], %62 {strides = array<i32>} : memref<1x1x2x128xf32, #tpu.memory_space<vmem>>, vector<1x1x2x128xf32>,
    } else {
    }
    return
  }
  func.func @transform_0(%arg0: i32, %arg1: i32, %arg2: i32) -> (i32, i32) {
    %c0_i32 = arith.constant 0 : i32
    %c0_i32_0 = arith.constant 0 : i32
    %c0_i32_1 = arith.constant 0 : i32
    return %c0_i32, %c0_i32_0 : i32, i32
  }
  func.func @transform_1(%arg0: i32, %arg1: i32, %arg2: i32) -> (i32, i32, i32, i32, i32) {
    %c0_i32 = arith.constant 0 : i32
    %c0_i32_0 = arith.constant 0 : i32
    %c0_i32_1 = arith.constant 0 : i32
    return %arg0, %c0_i32, %arg1, %arg2, %c0_i32_0 : i32, i32, i32, i32, i32
  }
  func.func @transform_2(%arg0: i32, %arg1: i32, %arg2: i32) -> (i32, i32, i32, i32, i32) {
    %c0_i32 = arith.constant 0 : i32
    %c0_i32_0 = arith.constant 0 : i32
    %c0_i32_1 = arith.constant 0 : i32
    return %arg0, %c0_i32, %arg1, %arg2, %c0_i32_0 : i32, i32, i32, i32, i32
  }
  func.func @transform_3(%arg0: i32, %arg1: i32, %arg2: i32) -> (i32, i32, i32, i32) {
    %c0_i32 = arith.constant 0 : i32
    %c0_i32_0 = arith.constant 0 : i32
    %c0_i32_1 = arith.constant 0 : i32
    return %arg0, %arg1, %c0_i32, %c0_i32_0 : i32, i32, i32, i32
  }
}

</mosaic_0001>

<bundles_post_ra>
// kernel: eq.8
= control target key start
LH: loop header
LB: loop body
LE: loop exit
PB: predicated region body
PF: predicated region fallthrough
CT: control target
= control target key end

     0   :  { %s67_s8 = smov 112   ;;  %s68_s11 = smov 80   ;;  %vm3_vm0 = vcmask 130048   ;;  %vm9_vm1 = vcmask 1048448   ;;  %vm15_vm2 = vcmask 917248   ;;  %vm21_vm3 = vcmask 786048   ;;  %s111_s0 = inlined_call_operand.vmem [shape: s32[2,16,16], index: 0, kind: input, shape index: {}]   ;;  %s112_s1 = inlined_call_operand.vmem [shape: s32[512], index: 1, kind: output, shape index: {}]  }
   0x1   :  { %v53_v0 = vld [vmem:[%s111_s0 + $0x7] ss:$8 sm:$0xf]   ;;  %v55_v1 = vld [vmem:[%s111_s0 + $0x5] ss:$8 sm:$0xf]  }
   0x2   :  { %7 = vrot.lane.b32.xlu0 %v53_v0, %s67_s8  ;;  %19 = vrot.lane.b32.xlu1 %v55_v1, %s68_s11  ;;  %v54_v2 = vld [vmem:[%s111_s0 + $0x6] ss:$8 sm:$0xf]   ;;  %v56_v3 = vld [vmem:[%s111_s0 + $0x4] ss:$8 sm:$0xf]  }
   0x3   :  { %s69_s16 = smov 96   ;;  %v2_v4 = vld [vmem:[%s111_s0] ss:$8 sm:$0xf]   ;;  %s70_s19 = smov 64   ;;  %vm27_vm4 = vcmask 654848  }
   0x4   :  { %v57_v5 = vld [vmem:[%s111_s0 + $0x3] ss:$8 sm:$0xf]   ;;  %4 = vst.msk [vmem:[#allocation0] sm:$0xf] %vm3_vm0, %v2_v4   ;;  %s71_s24 = smov 48  }
   0x5   :  { %v58_v6 = vld [vmem:[%s111_s0 + $0x2] ss:$8 sm:$0xf]   ;;  %s72_s25 = smov 32   ;;  %vm33_vm5 = vcmask 523648   ;;  %vm39_vm6 = vcmask 392448  }
   0x6   :  { %13 = vrot.lane.b32.xlu0 %v54_v2, %s69_s16  ;;  %25 = vrot.lane.b32.xlu1 %v56_v3, %s70_s19  ;;  %v59_v7 = vld [vmem:[%s111_s0 + $0x1] ss:$8 sm:$0xf]   ;;  %s73_s0 = smov 16   ;;  %vm45_vm7 = vcmask 261248  }
   0xa   :  { %31 = vrot.lane.b32.xlu0 %v57_v5, %s71_s24  ;;  %37 = vrot.lane.b32.xlu1 %v58_v6, %s72_s25 }
   0xe   :  { %43 = vrot.lane.b32.xlu0 %v59_v7, %s73_s0 }
  0x74   :  { %v8_v8 = vpop.permute.xlu0 %7   ;;  %v20_v9 = vpop.permute.xlu1 %19  }
  0x75   :  { %10 = vst.msk [vmem:[#allocation0] sm:$0xf] %vm9_vm1, %v8_v8  }
  0x78   :  { %v14_v10 = vpop.permute.xlu0 %13   ;;  %v26_v11 = vpop.permute.xlu1 %25  }
  0x79   :  { %16 = vst.msk [vmem:[#allocation0] sm:$0xf] %vm15_vm2, %v14_v10  }
  0x7a   :  { %22 = vst.msk [vmem:[#allocation0] sm:$0xf] %vm21_vm3, %v20_v9  }
  0x7b   :  { %28 = vst.msk [vmem:[#allocation0] sm:$0xf] %vm27_vm4, %v26_v11  }
  0x7c   :  { %v32_v12 = vpop.permute.xlu0 %31   ;;  %v38_v13 = vpop.permute.xlu1 %37  }
  0x7d   :  { %34 = vst.msk [vmem:[#allocation0] sm:$0xf] %vm33_vm5, %v32_v12  }
  0x7e   :  { %40 = vst.msk [vmem:[#allocation0] sm:$0xf] %vm39_vm6, %v38_v13  }
  0x80   :  { %v44_v14 = vpop.permute.xlu0 %43  }
  0x81   :  { %46 = vst.msk [vmem:[#allocation0] sm:$0xf] %vm45_vm7, %v44_v14  }
  0x88   :  { %v50_v15 = vld [vmem:[#allocation0] sm:$0xf] }
  0x89   :  { %52 = vst [vmem:[%s112_s1] sm:$0xf] %v50_v15 }

// kernel: ici_loss.1
= control target key start
LH: loop header
LB: loop body
LE: loop exit
PB: predicated region body
PF: predicated region fallthrough
CT: control target
= control target key end

     0   :  { %8 = vsyncpa [#allocation4], 0  ;;  %s566_s12 = smov 0   ;;  %s568_s13 = smov 0   ;;  %s636_s0 = inlined_call_operand.vmem [shape: f32[1,3], index: 0, kind: input, shape index: {}]   ;;  %s637_s1 = inlined_call_operand.vmem [shape: f32[2,3,1,2,128], index: 1, kind: input, shape index: {}]   ;;  %s638_s2 = inlined_call_operand.vmem [shape: s32[2,1,1,2,128], index: 2, kind: input, shape index: {}]   ;;  %s639_s3 = inlined_call_operand.vmem [shape: f32[2,1,2,128], index: 3, kind: output, shape index: {}]  }
   0x1   :  { %s570_s14 = smov 0  }
   0x2 LB: > { %s440_s15 = sadd.s32 4294967295, %s542_s14   ;;  %s33_s16 = sadd.s32 1, %s538_s13  ;;  %s542_s14 = sphi %s570_s14, %s14_s14   ;;  %s538_s13 = sphi %s568_s13, %s643_s13   ;;  %s534_s12 = sphi %s566_s12, %s642_s12  }
   0x3   : > { %p35_p0 = scmp.ge.s32.totalorder %s33_s16, 2  ;;  %p442_p1 = scmp.ge.s32.totalorder %s542_s14, 1 }
   0x4   : > { %p147_p2 = scmp.lt.s32.totalorder %s542_s14, 3  ;;  %p591_p4 = scmp.eq.s32.totalorder %s440_s15, 0 }
   0x5   : > { %s645_s16 = smov (%p35_p0, %s33_s16), 0  ;;  %s160_s21 = sshll.u32 %s636_s0, 4  ;;  %s161_s21 = int_to_ptr.vmem [resolvable:$true] %s160_s21 }
   0x6   : > { %p587_p3 = pnand %p442_p1, %p147_p2  ;;  %s501_s22 = scalar_lea.vmem %s161_s21, 16 }
   0x7   : > { %p502_p7 = scmp.ne.s32.totalorder %s161_s21, %s501_s22  ;;  %p509_p11 = scmp.lt.s32.totalorder %s161_s21, %s161_s21 }
   0x8   : > { %p459_p5 = pneg %p587_p3  ;;  %p510_p12 = scmp.lt.s32.totalorder %s501_s22, %s501_s22 }
   0xa   : > { %p460_p6 = pnand %p591_p4, %p459_p5  ;;  %p511_p13 = por %p510_p12, %p509_p11 }
   0xc   : > { %p503_p8 = pneg %p460_p6 }
   0xe   : > { %p504_p9 = pnand %p503_p8, %p502_p7 }
  0x10   : > { %p505_p10 = pneg %p504_p9 }
  0x12   : > { %p512_p0 = pnand %p511_p13, %p505_p10 }
  0x14   : > { %515 = shalt.err (!%p512_p0)
}
  0x15   : > { %s544_s23 = smov [#allocation3]   ;;  %200 = sbr.rel (%p587_p3) target bundleno = 113 (0x71), region = 32 }
  0x16   : > { %462 = dma.vmem_to_smem (!%p460_p6), %s161_s21, 16, %s544_s23, [#allocation4]  }
  0x1c   : > { %529 = dma.done.wait (%p591_p4), [#allocation4], 16  }
  0x1d   : > { %531 = vsyncadd (%p591_p4), [#allocation4], 4294967280 }
  0x1e   : > { %206 = sfence }
  0x1f   : > { %p243_p1 = scmp.lt.s32.totalorder %s534_s12, 1  ;;  %v545_v0 = vmov 0.0   ;;  %s451_s29 = sld [smem:[#allocation3 + $0x2]] }
  0x20   : > { %275 = vst [vmem:[#allocation2] sm:$0x3] %v545_v0  ;;  %s450_s6 = sld [smem:[#allocation3 + $0x1]]  ;;  %s280_s7 = sld [smem:[#allocation3]] }
  0x21   : > { %s647_s12 = smov (!%p243_p1, %s534_s12), 1 }
  0x22   : > { %s454_s24 = smul.u32 6, %s647_s12  ;;  %s448_s28 = sshll.u32 %s647_s12, 1 }
  0x23   : > { %s263_s5 = scalar_lea.vmem %s638_s2, %s448_s28  ;;  %s270_s10 = scalar_lea.vmem %s639_s3, %s448_s28 }
  0x24   : > { %s253_s27 = scalar_lea.vmem %s637_s1, %s454_s24  ;;  %v279_v17 = vld [vmem:[%s263_s5] sm:$0x3] }
  0x25   : > { %v276_v1 = vld [vmem:[%s253_s27] sm:$0x3]  ;;  %v277_v2 = vld [vmem:[%s253_s27 + $0x2] sm:$0x3]  ;;  %v278_v3 = vld [vmem:[%s253_s27 + $0x4] sm:$0x3]  ;;  %v304_v18 = vstv %s451_s29 }
  0x26   : > { %v283_v4 = vmax.f32 %v276_v1, %v277_v2  ;;  %vm303_vm0 = vcmp.eq.s32.totalorder %v279_v17, 2  ;;  %vm300_vm1 = vcmp.eq.s32.totalorder %v279_v17, 1  ;;  %v306_v20 = vstv %s450_s6 }
  0x27   : > { %v305_v19 = vsel %vm303_vm0, %v304_v18, 0.0  ;;  %vm299_vm2 = vcmp.eq.s32.totalorder %v279_v17, 0  ;;  %v301_v21 = vsel %vm300_vm1, %v277_v2, %v278_v3  ;;  %v308_v25 = vstv %s280_s7  ;;  %v318_v36 = vld [vmem:[#allocation2] sm:$0x3] }
  0x28   : > { %v284_v5 = vmax.f32 %v283_v4, %v278_v3  ;;  %v307_v24 = vsel %vm300_vm1, %v306_v20, %v305_v19  ;;  %v302_v26 = vsel %vm299_vm2, %v276_v1, %v301_v21 }
  0x29   : > { %v309_v28 = vsel %vm299_vm2, %v308_v25, %v307_v24 }
  0x2a   : > { %v285_v6 = vsub.f32 %v276_v1, %v284_v5  ;;  %v288_v7 = vsub.f32 %v277_v2, %v284_v5  ;;  %v292_v8 = vsub.f32 %v278_v3, %v284_v5 }
  0x2c   : > { %v286_v9 = vmul.f32 1.442695, %v285_v6  ;;  %v289_v10 = vmul.f32 1.442695, %v288_v7  ;;  %v293_v11 = vmul.f32 1.442695, %v292_v8 }
  0x2e   : > { %491 = vpow2.f32 %v286_v9 }
  0x2f   : > { %493 = vpow2.f32 %v289_v10 }
  0x30   : > { %495 = vpow2.f32 %v293_v11 }
  0x38   : > { %v492_v12 = vpop.eup %491 }
  0x39   : > { %v494_v13 = vpop.eup %493 }
  0x3a   : > { %v496_v14 = vpop.eup %495  ;;  %v291_v15 = vadd.f32 %v494_v13, %v492_v12 }
  0x3c   : > { %v295_v16 = vadd.f32 %v496_v14, %v291_v15 }
  0x3e   : > { %497 = vlog2.f32 %v295_v16 }
  0x48   : > { %v498_v22 = vpop.eup %497 }
  0x49   : > { %v297_v23 = vmul.f32 0.6931472, %v498_v22 }
  0x4b   : > { %v298_v27 = vadd.f32 %v297_v23, %v284_v5 }
  0x4d   : > { %v310_v29 = vsub.f32 %v298_v27, %v302_v26 }
  0x4f   : > { %v311_v30 = vmul.f32 %v310_v29, %v309_v28 }
  0x51   : > { %v312_v31 = vsub.f32 0.0, %v311_v30 }
  0x53   : > { %v313_v32 = vmul.f32 1.442695, %v312_v31 }
  0x55   : > { %499 = vpow2.f32 %v313_v32 }
  0x5f   : > { %v500_v33 = vpop.eup %499 }
  0x60   : > { %v315_v34 = vsub.f32 1.0, %v500_v33 }
  0x62   : > { %v316_v35 = vmul.f32 %v315_v34, %v315_v34 }
  0x64   : > { %v317_v37 = vmul.f32 %v316_v35, %v311_v30 }
  0x66   : > { %v319_v38 = vadd.f32 %v318_v36, %v317_v37 }
  0x68   : > { %320 = vst [vmem:[#allocation2] sm:$0x3] %v319_v38 }
  0x6f   : > { %v324_v39 = vld [vmem:[#allocation2] sm:$0x3] }
  0x70   : > { %325 = vst [vmem:[%s270_s10] sm:$0x3] %v324_v39 }
  0x71 PF: > { %s14_s14 = sadd.s32 1, %s542_s14   ;;  %s642_s12 = smov %s538_s13 }
  0x72   : > { %p11_p2 = scmp.ge.s32.totalorder %s14_s14, 4   ;;  %s643_s13 = smov %s645_s16 }
  0x74   :  { %13 = sbr.rel (!%p11_p2) target bundleno = 2 (0x2), region = 78 }
  0x7b   :  { %351 = vsyncpa [#allocation4], 1 }
  0x7c   :  { %353 = vsyncpa [#allocation4 + $0x1], 1 }

</bundles_post_ra>
